<compile_context>
chip_gen: v5e
topology: v5e:2x2
jax: 0.10.0
libtpu: 0.0.40
codegen_flags: <defaults>
</compile_context>

<pallas_src>
import math

import numpy as np
import jax
import jax.numpy as jnp
from jax.experimental import pallas as pl
from jax.experimental.pallas import tpu as pltpu


# ----------------------------------------------------------------------------
# Host-side weight preparation (run once, outside the forward path)
# ----------------------------------------------------------------------------
def _banded_weight(w_hwio, w_in, w_out, stride):
    """Expand a (3,3,Cin,Cout) HWIO kernel into 3 banded matrices.

    Returns (3, w_in*Cin, w_out*Cout) such that, for an UNPADDED channel-minor input
    row r (length w_in*Cin), r @ band[kh] is that row's kh-tap contribution to all
    w_out output positions (channel-minor).  Width padding (pad=1) and the output
    column stride are baked into the band structure (out-of-range taps are simply
    absent, i.e. zero).
    """
    cin, cout = w_hwio.shape[2], w_hwio.shape[3]
    iw = np.arange(w_in)[None, :, None]
    ow = np.arange(w_out)[None, None, :]
    kw = np.arange(3)[:, None, None]
    sel = jnp.asarray((iw == stride * ow + kw - 1).astype(np.float32))  # (3, w_in, w_out)
    band = jnp.einsum("qio,hqcd->hicod", sel, w_hwio)  # (3, w_in, cin, w_out, cout)
    return band.reshape(3, w_in * cin, w_out * cout)


def prepare_stem_params(params, H, W, eps=1e-5):
    """Precompute per-layer banded weights, tiled bias and folded BN affine terms."""
    layers = []
    Hi, Wi = H, W
    for p in params:
        Ci, Cm = p["w1"].shape[2], p["w1"].shape[3]
        Co = p["w2"].shape[3]
        assert Hi % 2 == 0 and Wi % 2 == 0, "stride-2 path assumes even H/W per layer"
        Ho, Wo = Hi // 2, Wi // 2

        wb1 = _banded_weight(p["w1"], Wi, Wi, 1).astype(jnp.bfloat16)
        wb2 = _banded_weight(p["w2"], Wi, Wo, 2).astype(jnp.bfloat16)
        b1 = jnp.tile(p["b1"], Wi).reshape(1, Wi * Cm).astype(jnp.float32)
        scale = p["gamma"] / jnp.sqrt(p["var"] + eps)
        shift = p["beta"] + (p["b2"] - p["mean"]) * scale          # conv2 bias folded in
        sc = jnp.tile(scale, Wo).reshape(1, Wo * Co).astype(jnp.float32)
        sh = jnp.tile(shift, Wo).reshape(1, Wo * Co).astype(jnp.float32)

        layers.append(dict(Hi=Hi, Wi=Wi, Ci=Ci, Cm=Cm, Co=Co, Ho=Ho, Wo=Wo,
                           wb1=wb1, b1=b1, wb2=wb2, sc=sc, sh=sh))
        Hi, Wi = Ho, Wo
    return layers


# ----------------------------------------------------------------------------
# Kernel
# ----------------------------------------------------------------------------
def _shift_down(x, block_rows, n_blocks):
    """x[r] -> x[r-1], zero at the first row of each per-image block."""
    rows, cols = x.shape
    sd = jnp.concatenate([jnp.zeros((1, cols), x.dtype), x[:rows - 1, :]], axis=0)
    if n_blocks > 1:
        ridx = jax.lax.broadcasted_iota(jnp.int32, (rows, cols), 0)
        sd = jnp.where(ridx % block_rows == 0, 0.0, sd)
    return sd


def _shift_up(x, block_rows, n_blocks):
    """x[r] -> x[r+1], zero at the last row of each per-image block."""
    rows, cols = x.shape
    su = jnp.concatenate([x[1:, :], jnp.zeros((1, cols), x.dtype)], axis=0)
    if n_blocks > 1:
        ridx = jax.lax.broadcasted_iota(jnp.int32, (rows, cols), 0)
        su = jnp.where(ridx % block_rows == block_rows - 1, 0.0, su)
    return su


def _make_stem_kernel(meta, r_tile):
    """meta: tuple of (Hi, Wi, Ci, Cmid, Cout, Ho, Wo) per Stem layer."""
    nl = len(meta)

    def kernel(*refs):
        x_ref = refs[0]
        par = refs[1:1 + 5 * nl]
        out_ref = refs[1 + 5 * nl]
        scratch = refs[2 + 5 * nl:]

        Hi0, Wi0, Ci0 = meta[0][0], meta[0][1], meta[0][2]
        # Lane-dense layer input: rows = (image, h), lanes = (w, c) channel-minor.
        cur = x_ref[...].reshape(r_tile * Hi0, Wi0 * Ci0)

        for i, (Hi, Wi, Ci, Cm, Co, Ho, Wo) in enumerate(meta):
            wb1, b1, wb2, sc, sh = par[5 * i:5 * i + 5]
            pmid = scratch[i]
            Mi, Mo = r_tile * Hi, r_tile * Ho

            # ---- conv1: 3x3, stride 1, pad 1 ------------------------------------
            # Width pad lives in the banded weights; height pad is realised by
            # shifting the per-tap partial sums (per-image blocks of Hi rows).
            lhs = cur.astype(jnp.bfloat16)                       # cast once
            c0 = jnp.dot(lhs, wb1[0], preferred_element_type=jnp.float32)
            c1 = jnp.dot(lhs, wb1[1], preferred_element_type=jnp.float32)
            c2 = jnp.dot(lhs, wb1[2], preferred_element_type=jnp.float32)
            h = c1 + _shift_down(c0, Hi, r_tile) + _shift_up(c2, Hi, r_tile)
            h = jnp.maximum(h + b1[...], 0.0)
            pmid[...] = h                                        # single aligned store

            # ---- conv2: 3x3, stride 2, pad 1 + fused BatchNorm affine ------------
            # Only two stride-2 row selections (even / odd rows of h); the third tap
            # is the odd-row partial sum shifted down by one output row.
            he = pmid[pl.ds(0, Mo, stride=2), :].astype(jnp.bfloat16)   # h[0::2]
            ho = pmid[pl.ds(1, Mo, stride=2), :].astype(jnp.bfloat16)   # h[1::2]
            d1 = jnp.dot(he, wb2[1], preferred_element_type=jnp.float32)
            d2 = jnp.dot(ho, wb2[2], preferred_element_type=jnp.float32)
            d0 = jnp.dot(ho, wb2[0], preferred_element_type=jnp.float32)
            y = d1 + d2 + _shift_down(d0, Ho, r_tile)
            y = y * sc[...] + sh[...]

            if i + 1 < nl:
                cur = y                                          # stays in VMEM/vregs
            else:
                out_ref[...] = y.reshape(r_tile, Ho, Wo * Co)    # lane-dense output

    return kernel


# ----------------------------------------------------------------------------
# Wrappers
# ----------------------------------------------------------------------------
def _pick_b_tile(n, h):
    """Images per grid step: fill the MXU M dim, keep >=2 grid steps for megacore."""
    target = max(1, min(64, 256 // max(h, 1)))
    bt = min(n, target)
    if n >= 2:
        bt = max(1, min(bt, n // 2))     # keep >=2 parallel grid steps (v7x megacore)
    while n % bt:
        bt -= 1
    return bt


def stem_forward_nhwc(x_nhwc, layers, b_tile=None):
    """NHWC-native fast path (no layout transposes)."""
    N, H, W, C = x_nhwc.shape
    m0 = layers[0]
    assert (H, W, C) == (m0["Hi"], m0["Wi"], m0["Ci"])
    R = _pick_b_tile(N, H) if b_tile is None else b_tile
    assert N % R == 0

    x = x_nhwc.reshape(N, H, W * C).astype(jnp.float32)

    inputs = [x]
    in_specs = [pl.BlockSpec((R, H, W * C), lambda b: (b, 0, 0))]
    scratch_shapes = []
    for m in layers:
        inputs += [m["wb1"], m["b1"], m["wb2"], m["sc"], m["sh"]]
        in_specs += [
            pl.BlockSpec(m["wb1"].shape, lambda b: (0, 0, 0)),
            pl.BlockSpec(m["b1"].shape, lambda b: (0, 0)),
            pl.BlockSpec(m["wb2"].shape, lambda b: (0, 0, 0)),
            pl.BlockSpec(m["sc"].shape, lambda b: (0, 0)),
            pl.BlockSpec(m["sh"].shape, lambda b: (0, 0)),
        ]
        # conv1 output slab (kept f32: each element is still cast to bf16 exactly once
        # via the even/odd partition, and stride-2 sublane reads stay on the simple path).
        scratch_shapes.append(pltpu.VMEM((R * m["Hi"], m["Wi"] * m["Cm"]), jnp.float32))

    meta = tuple((m["Hi"], m["Wi"], m["Ci"], m["Cm"], m["Co"], m["Ho"], m["Wo"])
                 for m in layers)
    mf = layers[-1]
    Hf, Wf, Cf = mf["Ho"], mf["Wo"], mf["Co"]

    out = pl.pallas_call(
        _make_stem_kernel(meta, R),
        out_shape=jax.ShapeDtypeStruct((N, Hf, Wf * Cf), jnp.float32),
        grid=(N // R,),
        in_specs=in_specs,
        out_specs=pl.BlockSpec((R, Hf, Wf * Cf), lambda b: (b, 0, 0)),
        scratch_shapes=scratch_shapes,
        compiler_params=pltpu.CompilerParams(
            dimension_semantics=("parallel",)),
    )(*inputs)

    return out.reshape(N, Hf, Wf, Cf)


def stem_forward_pallas(x_nchw, layers, b_tile=None):
    """NCHW adapter matching the PyTorch module contract.

    NOTE: layout-flexible callers should use stem_forward_nhwc directly and skip
    these two transpose HBM passes.
    """
    x_nhwc = jnp.transpose(x_nchw, (0, 2, 3, 1))
    out_nhwc = stem_forward_nhwc(x_nhwc, layers, b_tile)       # (N, Ho, Wo, Cout)
    return jnp.transpose(out_nhwc, (0, 3, 1, 2))               # NHWC -> NCHW


# ----------------------------------------------------------------------------
# Parameters / reference
# ----------------------------------------------------------------------------
def init_stem_params(key, patch_size, in_chans, embed_dim):
    """Deterministic synthetic parameters matching Stem.__init__ shapes (HWIO convs)."""
    times = int(math.log(patch_size, 2))
    params = []
    for i in range(times):
        cin = in_chans if i == 0 else embed_dim // 2 ** (times - i)
        dim = embed_dim // 2 ** (times - i - 1)
        key, k1, k2, k3, k4, k5, k6, k7, k8 = jax.random.split(key, 9)
        params.append(dict(
            w1=jax.random.normal(k1, (3, 3, cin, dim // 2), jnp.float32)
               / math.sqrt(9 * cin),
            b1=0.1 * jax.random.normal(k2, (dim // 2,), jnp.float32),
            w2=jax.random.normal(k3, (3, 3, dim // 2, dim), jnp.float32)
               / math.sqrt(9 * (dim // 2)),
            b2=0.1 * jax.random.normal(k4, (dim,), jnp.float32),
            gamma=1.0 + 0.1 * jax.random.normal(k5, (dim,), jnp.float32),
            beta=0.1 * jax.random.normal(k6, (dim,), jnp.float32),
            mean=0.05 * jax.random.normal(k7, (dim,), jnp.float32),
            var=1.0 + 0.1 * jnp.abs(jax.random.normal(k8, (dim,), jnp.float32)),
        ))
    return params


def stem_forward_reference(x_nchw, params, eps=1e-5):
    """Pure-JAX reference (lax.conv) with identical NHWC/HWIO semantics."""
    dn = ("NHWC", "HWIO", "NHWC")
    x = jnp.transpose(x_nchw, (0, 2, 3, 1))
    for p in params:
        y = jax.lax.conv_general_dilated(
            x, p["w1"], (1, 1), ((1, 1), (1, 1)), dimension_numbers=dn,
            precision=jax.lax.Precision.HIGHEST) + p["b1"]
        y = jnp.maximum(y, 0.0)
        y = jax.lax.conv_general_dilated(
            y, p["w2"], (2, 2), ((1, 1), (1, 1)), dimension_numbers=dn,
            precision=jax.lax.Precision.HIGHEST) + p["b2"]
        x = (y - p["mean"]) / jnp.sqrt(p["var"] + eps) * p["gamma"] + p["beta"]
    return jnp.transpose(x, (0, 3, 1, 2))


if __name__ == "__main__":
    patch_size, in_chans, embed_dim = 4, 4, 32
    N, H, W = 2, 16, 16

    key = jax.random.PRNGKey(0)
    kx, kp = jax.random.split(key)
    x = jax.random.normal(kx, (N, in_chans, H, W), jnp.float32)    # NCHW input
    params = init_stem_params(kp, patch_size, in_chans, embed_dim)
    prepared = prepare_stem_params(params, H, W)                   # built once

    out = stem_forward_pallas(x, prepared)
    out = jax.block_until_ready(out)

    assert out.shape == (N, embed_dim, H // patch_size, W // patch_size), out.shape

    ref = stem_forward_reference(x, params)
    if not bool(jnp.allclose(out, ref, rtol=5e-2, atol=5e-2)):
        print("max abs diff:", float(jnp.max(jnp.abs(out - ref))))
        raise SystemExit(1)

    print("KERNEL_OK")
</pallas_src>

<mosaic_0001>
module attributes {stable_mosaic.version = 11 : i64} {
  func.func @kernel(%arg0: i32, %arg1: memref<1x16x64xf32, #tpu.memory_space<vmem>>, %arg2: memref<3x64x128xbf16, #tpu.memory_space<vmem>>, %arg3: memref<1x128xf32, #tpu.memory_space<vmem>>, %arg4: memref<3x128x128xbf16, #tpu.memory_space<vmem>>, %arg5: memref<1x128xf32, #tpu.memory_space<vmem>>, %arg6: memref<1x128xf32, #tpu.memory_space<vmem>>, %arg7: memref<3x128x128xbf16, #tpu.memory_space<vmem>>, %arg8: memref<1x128xf32, #tpu.memory_space<vmem>>, %arg9: memref<3x128x128xbf16, #tpu.memory_space<vmem>>, %arg10: memref<1x128xf32, #tpu.memory_space<vmem>>, %arg11: memref<1x128xf32, #tpu.memory_space<vmem>>, %arg12: memref<1x4x128xf32, #tpu.memory_space<vmem>>, %arg13: memref<16x128xf32, #tpu.memory_space<vmem>>, %arg14: memref<8x128xf32, #tpu.memory_space<vmem>>) attributes {dimension_semantics = [#tpu.dimension_semantics<parallel>], iteration_bounds = array<i64: 2>, scalar_prefetch = 0 : i64, scratch_operands = 2 : i64, tpu.core_type = #tpu.core_type<tc>, window_params = [{transform_indices = @transform_0, window_bounds = array<i64: 1, 16, 64>}, {pipeline_mode = #tpu.pipeline_mode<synchronous>, transform_indices = @transform_1, window_bounds = array<i64: 3, 64, 128>}, {pipeline_mode = #tpu.pipeline_mode<synchronous>, transform_indices = @transform_2, window_bounds = array<i64: 1, 128>}, {pipeline_mode = #tpu.pipeline_mode<synchronous>, transform_indices = @transform_3, window_bounds = array<i64: 3, 128, 128>}, {pipeline_mode = #tpu.pipeline_mode<synchronous>, transform_indices = @transform_4, window_bounds = array<i64: 1, 128>}, {pipeline_mode = #tpu.pipeline_mode<synchronous>, transform_indices = @transform_5, window_bounds = array<i64: 1, 128>}, {pipeline_mode = #tpu.pipeline_mode<synchronous>, transform_indices = @transform_6, window_bounds = array<i64: 3, 128, 128>}, {pipeline_mode = #tpu.pipeline_mode<synchronous>, transform_indices = @transform_7, window_bounds = array<i64: 1, 128>}, {pipeline_mode = #tpu.pipeline_mode<synchronous>, transform_indices = @transform_8, window_bounds = array<i64: 3, 128, 128>}, {pipeline_mode = #tpu.pipeline_mode<synchronous>, transform_indices = @transform_9, window_bounds = array<i64: 1, 128>}, {pipeline_mode = #tpu.pipeline_mode<synchronous>, transform_indices = @transform_10, window_bounds = array<i64: 1, 128>}, {transform_indices = @transform_11, window_bounds = array<i64: 1, 4, 128>}]} {
    %c0 = arith.constant 0 : index
    %c0_0 = arith.constant 0 : index
    %c0_1 = arith.constant 0 : index
    %0 = vector.load %arg1[%c0, %c0_0, %c0_1] : memref<1x16x64xf32, #tpu.memory_space<vmem>>, vector<1x16x64xf32>
    %1 = vector.shape_cast %0 : vector<1x16x64xf32> to vector<16x64xf32>
    %2 = arith.truncf %1 : vector<16x64xf32> to vector<16x64xbf16>
    %c0_2 = arith.constant 0 : index
    %c0_3 = arith.constant 0 : index
    %c0_4 = arith.constant 0 : index
    %3 = vector.load %arg2[%c0_2, %c0_3, %c0_4] : memref<3x64x128xbf16, #tpu.memory_space<vmem>>, vector<1x64x128xbf16>
    %4 = vector.shape_cast %3 : vector<1x64x128xbf16> to vector<64x128xbf16>
    %cst = arith.constant dense<0.000000e+00> : vector<16x128xf32>
    %5 = tpu.matmul %2, %4, %cst {dimension_numbers = #tpu.dot_dimension_numbers<[1], [0], [0], [1], [0, 0, 1, 1], [], []>} : vector<16x64xbf16>, vector<64x128xbf16>, vector<16x128xf32> -> vector<16x128xf32>
    %c1 = arith.constant 1 : index
    %c0_5 = arith.constant 0 : index
    %c0_6 = arith.constant 0 : index
    %6 = vector.load %arg2[%c1, %c0_5, %c0_6] : memref<3x64x128xbf16, #tpu.memory_space<vmem>>, vector<1x64x128xbf16>
    %7 = vector.shape_cast %6 : vector<1x64x128xbf16> to vector<64x128xbf16>
    %cst_7 = arith.constant dense<0.000000e+00> : vector<16x128xf32>
    %8 = tpu.matmul %2, %7, %cst_7 {dimension_numbers = #tpu.dot_dimension_numbers<[1], [0], [0], [1], [0, 0, 1, 1], [], []>} : vector<16x64xbf16>, vector<64x128xbf16>, vector<16x128xf32> -> vector<16x128xf32>
    %c2 = arith.constant 2 : index
    %c0_8 = arith.constant 0 : index
    %c0_9 = arith.constant 0 : index
    %9 = vector.load %arg2[%c2, %c0_8, %c0_9] : memref<3x64x128xbf16, #tpu.memory_space<vmem>>, vector<1x64x128xbf16>
    %10 = vector.shape_cast %9 : vector<1x64x128xbf16> to vector<64x128xbf16>
    %cst_10 = arith.constant dense<0.000000e+00> : vector<16x128xf32>
    %11 = tpu.matmul %2, %10, %cst_10 {dimension_numbers = #tpu.dot_dimension_numbers<[1], [0], [0], [1], [0, 0, 1, 1], [], []>} : vector<16x64xbf16>, vector<64x128xbf16>, vector<16x128xf32> -> vector<16x128xf32>
    %cst_11 = arith.constant 0.000000e+00 : f32
    %12 = vector.broadcast %cst_11 : f32 to vector<1x128xf32>
    %13 = vector.extract_strided_slice %5 {offsets = [0, 0], sizes = [15, 128], strides = [1, 1]} : vector<16x128xf32> to vector<15x128xf32>
    %14 = tpu.concatenate %12, %13 in 0 : vector<1x128xf32>, vector<15x128xf32> -> vector<16x128xf32>
    %15 = arith.addf %8, %14 : vector<16x128xf32>
    %16 = vector.extract_strided_slice %11 {offsets = [1, 0], sizes = [15, 128], strides = [1, 1]} : vector<16x128xf32> to vector<15x128xf32>
    %cst_12 = arith.constant 0.000000e+00 : f32
    %17 = vector.broadcast %cst_12 : f32 to vector<1x128xf32>
    %18 = tpu.concatenate %16, %17 in 0 : vector<15x128xf32>, vector<1x128xf32> -> vector<16x128xf32>
    %19 = arith.addf %15, %18 : vector<16x128xf32>
    %c0_13 = arith.constant 0 : index
    %c0_14 = arith.constant 0 : index
    %20 = vector.load %arg3[%c0_13, %c0_14] : memref<1x128xf32, #tpu.memory_space<vmem>>, vector<1x128xf32>
    %21 = vector.broadcast %20 : vector<1x128xf32> to vector<16x128xf32>
    %22 = arith.addf %19, %21 : vector<16x128xf32>
    %cst_15 = arith.constant 0.000000e+00 : f32
    %23 = vector.broadcast %cst_15 : f32 to vector<16x128xf32>
    %24 = arith.maximumf %22, %23 : vector<16x128xf32>
    %c0_16 = arith.constant 0 : index
    %c0_17 = arith.constant 0 : index
    %25 = vector.load %arg13[%c0_16, %c0_17] : memref<16x128xf32, #tpu.memory_space<vmem>>, vector<16x128xf32>
    tpu.vector_store %arg13[%c0_16, %c0_17], %24 {strides = array<i32>} : memref<16x128xf32, #tpu.memory_space<vmem>>, vector<16x128xf32>,
    %c0_18 = arith.constant 0 : index
    %c0_19 = arith.constant 0 : index
    %26 = tpu.strided_load %arg13[%c0_18, %c0_19] {strides = array<i32: 2, 1>} : memref<16x128xf32, #tpu.memory_space<vmem>>, vector<8x128xf32>
    %27 = arith.truncf %26 : vector<8x128xf32> to vector<8x128xbf16>
    %c1_20 = arith.constant 1 : index
    %c0_21 = arith.constant 0 : index
    %28 = tpu.strided_load %arg13[%c1_20, %c0_21] {strides = array<i32: 2, 1>} : memref<16x128xf32, #tpu.memory_space<vmem>>, vector<8x128xf32>
    %29 = arith.truncf %28 : vector<8x128xf32> to vector<8x128xbf16>
    %c1_22 = arith.constant 1 : index
    %c0_23 = arith.constant 0 : index
    %c0_24 = arith.constant 0 : index
    %30 = vector.load %arg4[%c1_22, %c0_23, %c0_24] : memref<3x128x128xbf16, #tpu.memory_space<vmem>>, vector<1x128x128xbf16>
    %31 = vector.shape_cast %30 : vector<1x128x128xbf16> to vector<128x128xbf16>
    %cst_25 = arith.constant dense<0.000000e+00> : vector<8x128xf32>
    %32 = tpu.matmul %27, %31, %cst_25 {dimension_numbers = #tpu.dot_dimension_numbers<[1], [0], [0], [1], [0, 0, 1, 1], [], []>} : vector<8x128xbf16>, vector<128x128xbf16>, vector<8x128xf32> -> vector<8x128xf32>
    %c2_26 = arith.constant 2 : index
    %c0_27 = arith.constant 0 : index
    %c0_28 = arith.constant 0 : index
    %33 = vector.load %arg4[%c2_26, %c0_27, %c0_28] : memref<3x128x128xbf16, #tpu.memory_space<vmem>>, vector<1x128x128xbf16>
    %34 = vector.shape_cast %33 : vector<1x128x128xbf16> to vector<128x128xbf16>
    %cst_29 = arith.constant dense<0.000000e+00> : vector<8x128xf32>
    %35 = tpu.matmul %29, %34, %cst_29 {dimension_numbers = #tpu.dot_dimension_numbers<[1], [0], [0], [1], [0, 0, 1, 1], [], []>} : vector<8x128xbf16>, vector<128x128xbf16>, vector<8x128xf32> -> vector<8x128xf32>
    %c0_30 = arith.constant 0 : index
    %c0_31 = arith.constant 0 : index
    %c0_32 = arith.constant 0 : index
    %36 = vector.load %arg4[%c0_30, %c0_31, %c0_32] : memref<3x128x128xbf16, #tpu.memory_space<vmem>>, vector<1x128x128xbf16>
    %37 = vector.shape_cast %36 : vector<1x128x128xbf16> to vector<128x128xbf16>
    %cst_33 = arith.constant dense<0.000000e+00> : vector<8x128xf32>
    %38 = tpu.matmul %29, %37, %cst_33 {dimension_numbers = #tpu.dot_dimension_numbers<[1], [0], [0], [1], [0, 0, 1, 1], [], []>} : vector<8x128xbf16>, vector<128x128xbf16>, vector<8x128xf32> -> vector<8x128xf32>
    %39 = arith.addf %32, %35 : vector<8x128xf32>
    %cst_34 = arith.constant 0.000000e+00 : f32
    %40 = vector.broadcast %cst_34 : f32 to vector<1x128xf32>
    %41 = vector.extract_strided_slice %38 {offsets = [0, 0], sizes = [7, 128], strides = [1, 1]} : vector<8x128xf32> to vector<7x128xf32>
    %42 = tpu.concatenate %40, %41 in 0 : vector<1x128xf32>, vector<7x128xf32> -> vector<8x128xf32>
    %43 = arith.addf %39, %42 : vector<8x128xf32>
    %c0_35 = arith.constant 0 : index
    %c0_36 = arith.constant 0 : index
    %44 = vector.load %arg5[%c0_35, %c0_36] : memref<1x128xf32, #tpu.memory_space<vmem>>, vector<1x128xf32>
    %45 = vector.broadcast %44 : vector<1x128xf32> to vector<8x128xf32>
    %46 = arith.mulf %43, %45 : vector<8x128xf32>
    %c0_37 = arith.constant 0 : index
    %c0_38 = arith.constant 0 : index
    %47 = vector.load %arg6[%c0_37, %c0_38] : memref<1x128xf32, #tpu.memory_space<vmem>>, vector<1x128xf32>
    %48 = vector.broadcast %47 : vector<1x128xf32> to vector<8x128xf32>
    %49 = arith.addf %46, %48 : vector<8x128xf32>
    %50 = arith.truncf %49 : vector<8x128xf32> to vector<8x128xbf16>
    %c0_39 = arith.constant 0 : index
    %c0_40 = arith.constant 0 : index
    %c0_41 = arith.constant 0 : index
    %51 = vector.load %arg7[%c0_39, %c0_40, %c0_41] : memref<3x128x128xbf16, #tpu.memory_space<vmem>>, vector<1x128x128xbf16>
    %52 = vector.shape_cast %51 : vector<1x128x128xbf16> to vector<128x128xbf16>
    %cst_42 = arith.constant dense<0.000000e+00> : vector<8x128xf32>
    %53 = tpu.matmul %50, %52, %cst_42 {dimension_numbers = #tpu.dot_dimension_numbers<[1], [0], [0], [1], [0, 0, 1, 1], [], []>} : vector<8x128xbf16>, vector<128x128xbf16>, vector<8x128xf32> -> vector<8x128xf32>
    %c1_43 = arith.constant 1 : index
    %c0_44 = arith.constant 0 : index
    %c0_45 = arith.constant 0 : index
    %54 = vector.load %arg7[%c1_43, %c0_44, %c0_45] : memref<3x128x128xbf16, #tpu.memory_space<vmem>>, vector<1x128x128xbf16>
    %55 = vector.shape_cast %54 : vector<1x128x128xbf16> to vector<128x128xbf16>
    %cst_46 = arith.constant dense<0.000000e+00> : vector<8x128xf32>
    %56 = tpu.matmul %50, %55, %cst_46 {dimension_numbers = #tpu.dot_dimension_numbers<[1], [0], [0], [1], [0, 0, 1, 1], [], []>} : vector<8x128xbf16>, vector<128x128xbf16>, vector<8x128xf32> -> vector<8x128xf32>
    %c2_47 = arith.constant 2 : index
    %c0_48 = arith.constant 0 : index
    %c0_49 = arith.constant 0 : index
    %57 = vector.load %arg7[%c2_47, %c0_48, %c0_49] : memref<3x128x128xbf16, #tpu.memory_space<vmem>>, vector<1x128x128xbf16>
    %58 = vector.shape_cast %57 : vector<1x128x128xbf16> to vector<128x128xbf16>
    %cst_50 = arith.constant dense<0.000000e+00> : vector<8x128xf32>
    %59 = tpu.matmul %50, %58, %cst_50 {dimension_numbers = #tpu.dot_dimension_numbers<[1], [0], [0], [1], [0, 0, 1, 1], [], []>} : vector<8x128xbf16>, vector<128x128xbf16>, vector<8x128xf32> -> vector<8x128xf32>
    %cst_51 = arith.constant 0.000000e+00 : f32
    %60 = vector.broadcast %cst_51 : f32 to vector<1x128xf32>
    %61 = vector.extract_strided_slice %53 {offsets = [0, 0], sizes = [7, 128], strides = [1, 1]} : vector<8x128xf32> to vector<7x128xf32>
    %62 = tpu.concatenate %60, %61 in 0 : vector<1x128xf32>, vector<7x128xf32> -> vector<8x128xf32>
    %63 = arith.addf %56, %62 : vector<8x128xf32>
    %64 = vector.extract_strided_slice %59 {offsets = [1, 0], sizes = [7, 128], strides = [1, 1]} : vector<8x128xf32> to vector<7x128xf32>
    %cst_52 = arith.constant 0.000000e+00 : f32
    %65 = vector.broadcast %cst_52 : f32 to vector<1x128xf32>
    %66 = tpu.concatenate %64, %65 in 0 : vector<7x128xf32>, vector<1x128xf32> -> vector<8x128xf32>
    %67 = arith.addf %63, %66 : vector<8x128xf32>
    %c0_53 = arith.constant 0 : index
    %c0_54 = arith.constant 0 : index
    %68 = vector.load %arg8[%c0_53, %c0_54] : memref<1x128xf32, #tpu.memory_space<vmem>>, vector<1x128xf32>
    %69 = vector.broadcast %68 : vector<1x128xf32> to vector<8x128xf32>
    %70 = arith.addf %67, %69 : vector<8x128xf32>
    %cst_55 = arith.constant 0.000000e+00 : f32
    %71 = vector.broadcast %cst_55 : f32 to vector<8x128xf32>
    %72 = arith.maximumf %70, %71 : vector<8x128xf32>
    %c0_56 = arith.constant 0 : index
    %c0_57 = arith.constant 0 : index
    %73 = vector.load %arg14[%c0_56, %c0_57] : memref<8x128xf32, #tpu.memory_space<vmem>>, vector<8x128xf32>
    tpu.vector_store %arg14[%c0_56, %c0_57], %72 {strides = array<i32>} : memref<8x128xf32, #tpu.memory_space<vmem>>, vector<8x128xf32>,
    %c0_58 = arith.constant 0 : index
    %c0_59 = arith.constant 0 : index
    %74 = tpu.strided_load %arg14[%c0_58, %c0_59] {strides = array<i32: 2, 1>} : memref<8x128xf32, #tpu.memory_space<vmem>>, vector<4x128xf32>
    %75 = arith.truncf %74 : vector<4x128xf32> to vector<4x128xbf16>
    %c1_60 = arith.constant 1 : index
    %c0_61 = arith.constant 0 : index
    %76 = tpu.strided_load %arg14[%c1_60, %c0_61] {strides = array<i32: 2, 1>} : memref<8x128xf32, #tpu.memory_space<vmem>>, vector<4x128xf32>
    %77 = arith.truncf %76 : vector<4x128xf32> to vector<4x128xbf16>
    %c1_62 = arith.constant 1 : index
    %c0_63 = arith.constant 0 : index
    %c0_64 = arith.constant 0 : index
    %78 = vector.load %arg9[%c1_62, %c0_63, %c0_64] : memref<3x128x128xbf16, #tpu.memory_space<vmem>>, vector<1x128x128xbf16>
    %79 = vector.shape_cast %78 : vector<1x128x128xbf16> to vector<128x128xbf16>
    %cst_65 = arith.constant dense<0.000000e+00> : vector<4x128xf32>
    %80 = tpu.matmul %75, %79, %cst_65 {dimension_numbers = #tpu.dot_dimension_numbers<[1], [0], [0], [1], [0, 0, 1, 1], [], []>} : vector<4x128xbf16>, vector<128x128xbf16>, vector<4x128xf32> -> vector<4x128xf32>
    %c2_66 = arith.constant 2 : index
    %c0_67 = arith.constant 0 : index
    %c0_68 = arith.constant 0 : index
    %81 = vector.load %arg9[%c2_66, %c0_67, %c0_68] : memref<3x128x128xbf16, #tpu.memory_space<vmem>>, vector<1x128x128xbf16>
    %82 = vector.shape_cast %81 : vector<1x128x128xbf16> to vector<128x128xbf16>
    %cst_69 = arith.constant dense<0.000000e+00> : vector<4x128xf32>
    %83 = tpu.matmul %77, %82, %cst_69 {dimension_numbers = #tpu.dot_dimension_numbers<[1], [0], [0], [1], [0, 0, 1, 1], [], []>} : vector<4x128xbf16>, vector<128x128xbf16>, vector<4x128xf32> -> vector<4x128xf32>
    %c0_70 = arith.constant 0 : index
    %c0_71 = arith.constant 0 : index
    %c0_72 = arith.constant 0 : index
    %84 = vector.load %arg9[%c0_70, %c0_71, %c0_72] : memref<3x128x128xbf16, #tpu.memory_space<vmem>>, vector<1x128x128xbf16>
    %85 = vector.shape_cast %84 : vector<1x128x128xbf16> to vector<128x128xbf16>
    %cst_73 = arith.constant dense<0.000000e+00> : vector<4x128xf32>
    %86 = tpu.matmul %77, %85, %cst_73 {dimension_numbers = #tpu.dot_dimension_numbers<[1], [0], [0], [1], [0, 0, 1, 1], [], []>} : vector<4x128xbf16>, vector<128x128xbf16>, vector<4x128xf32> -> vector<4x128xf32>
    %87 = arith.addf %80, %83 : vector<4x128xf32>
    %cst_74 = arith.constant 0.000000e+00 : f32
    %88 = vector.broadcast %cst_74 : f32 to vector<1x128xf32>
    %89 = vector.extract_strided_slice %86 {offsets = [0, 0], sizes = [3, 128], strides = [1, 1]} : vector<4x128xf32> to vector<3x128xf32>
    %90 = tpu.concatenate %88, %89 in 0 : vector<1x128xf32>, vector<3x128xf32> -> vector<4x128xf32>
    %91 = arith.addf %87, %90 : vector<4x128xf32>
    %c0_75 = arith.constant 0 : index
    %c0_76 = arith.constant 0 : index
    %92 = vector.load %arg10[%c0_75, %c0_76] : memref<1x128xf32, #tpu.memory_space<vmem>>, vector<1x128xf32>
    %93 = vector.broadcast %92 : vector<1x128xf32> to vector<4x128xf32>
    %94 = arith.mulf %91, %93 : vector<4x128xf32>
    %c0_77 = arith.constant 0 : index
    %c0_78 = arith.constant 0 : index
    %95 = vector.load %arg11[%c0_77, %c0_78] : memref<1x128xf32, #tpu.memory_space<vmem>>, vector<1x128xf32>
    %96 = vector.broadcast %95 : vector<1x128xf32> to vector<4x128xf32>
    %97 = arith.addf %94, %96 : vector<4x128xf32>
    %98 = vector.shape_cast %97 : vector<4x128xf32> to vector<1x4x128xf32>
    %c0_79 = arith.constant 0 : index
    %c0_80 = arith.constant 0 : index
    %c0_81 = arith.constant 0 : index
    %99 = vector.load %arg12[%c0_79, %c0_80, %c0_81] : memref<1x4x128xf32, #tpu.memory_space<vmem>>, vector<1x4x128xf32>
    tpu.vector_store %arg12[%c0_79, %c0_80, %c0_81], %98 {strides = array<i32>} : memref<1x4x128xf32, #tpu.memory_space<vmem>>, vector<1x4x128xf32>,
    return
  }
  func.func @transform_0(%arg0: i32) -> (i32, i32, i32) {
    %c0_i32 = arith.constant 0 : i32
    %c0_i32_0 = arith.constant 0 : i32
    %c0_i32_1 = arith.constant 0 : i32
    return %arg0, %c0_i32, %c0_i32_0 : i32, i32, i32
  }
  func.func @transform_1(%arg0: i32) -> (i32, i32, i32) {
    %c0_i32 = arith.constant 0 : i32
    %c0_i32_0 = arith.constant 0 : i32
    %c0_i32_1 = arith.constant 0 : i32
    %c0_i32_2 = arith.constant 0 : i32
    return %c0_i32, %c0_i32_0, %c0_i32_1 : i32, i32, i32
  }
  func.func @transform_2(%arg0: i32) -> (i32, i32) {
    %c0_i32 = arith.constant 0 : i32
    %c0_i32_0 = arith.constant 0 : i32
    %c0_i32_1 = arith.constant 0 : i32
    return %c0_i32, %c0_i32_0 : i32, i32
  }
  func.func @transform_3(%arg0: i32) -> (i32, i32, i32) {
    %c0_i32 = arith.constant 0 : i32
    %c0_i32_0 = arith.constant 0 : i32
    %c0_i32_1 = arith.constant 0 : i32
    %c0_i32_2 = arith.constant 0 : i32
    return %c0_i32, %c0_i32_0, %c0_i32_1 : i32, i32, i32
  }
  func.func @transform_4(%arg0: i32) -> (i32, i32) {
    %c0_i32 = arith.constant 0 : i32
    %c0_i32_0 = arith.constant 0 : i32
    %c0_i32_1 = arith.constant 0 : i32
    return %c0_i32, %c0_i32_0 : i32, i32
  }
  func.func @transform_5(%arg0: i32) -> (i32, i32) {
    %c0_i32 = arith.constant 0 : i32
    %c0_i32_0 = arith.constant 0 : i32
    %c0_i32_1 = arith.constant 0 : i32
    return %c0_i32, %c0_i32_0 : i32, i32
  }
  func.func @transform_6(%arg0: i32) -> (i32, i32, i32) {
    %c0_i32 = arith.constant 0 : i32
    %c0_i32_0 = arith.constant 0 : i32
    %c0_i32_1 = arith.constant 0 : i32
    %c0_i32_2 = arith.constant 0 : i32
    return %c0_i32, %c0_i32_0, %c0_i32_1 : i32, i32, i32
  }
  func.func @transform_7(%arg0: i32) -> (i32, i32) {
    %c0_i32 = arith.constant 0 : i32
    %c0_i32_0 = arith.constant 0 : i32
    %c0_i32_1 = arith.constant 0 : i32
    return %c0_i32, %c0_i32_0 : i32, i32
  }
  func.func @transform_8(%arg0: i32) -> (i32, i32, i32) {
    %c0_i32 = arith.constant 0 : i32
    %c0_i32_0 = arith.constant 0 : i32
    %c0_i32_1 = arith.constant 0 : i32
    %c0_i32_2 = arith.constant 0 : i32
    return %c0_i32, %c0_i32_0, %c0_i32_1 : i32, i32, i32
  }
  func.func @transform_9(%arg0: i32) -> (i32, i32) {
    %c0_i32 = arith.constant 0 : i32
    %c0_i32_0 = arith.constant 0 : i32
    %c0_i32_1 = arith.constant 0 : i32
    return %c0_i32, %c0_i32_0 : i32, i32
  }
  func.func @transform_10(%arg0: i32) -> (i32, i32) {
    %c0_i32 = arith.constant 0 : i32
    %c0_i32_0 = arith.constant 0 : i32
    %c0_i32_1 = arith.constant 0 : i32
    return %c0_i32, %c0_i32_0 : i32, i32
  }
  func.func @transform_11(%arg0: i32) -> (i32, i32, i32) {
    %c0_i32 = arith.constant 0 : i32
    %c0_i32_0 = arith.constant 0 : i32
    %c0_i32_1 = arith.constant 0 : i32
    return %arg0, %c0_i32, %c0_i32_0 : i32, i32, i32
  }
}

</mosaic_0001>

<bundles_post_ra>
// kernel: tpu_custom_call.1
= control target key start
LH: loop header
LB: loop body
LE: loop exit
PB: predicated region body
PF: predicated region fallthrough
CT: control target
= control target key end

     0   :  { %s2558_s0 = inlined_call_operand.hbm [shape: f32[2,16,64], index: 0, kind: input, shape index: {}]   ;;  %s2559_s1 = inlined_call_operand.hbm [shape: bf16[3,64,128], index: 1, kind: input, shape index: {}]   ;;  %s2560_s2 = inlined_call_operand.vmem [shape: f32[1,128], index: 2, kind: input, shape index: {}]   ;;  %s2561_s3 = inlined_call_operand.hbm [shape: bf16[3,128,128], index: 3, kind: input, shape index: {}]   ;;  %s2562_s4 = inlined_call_operand.vmem [shape: f32[1,128], index: 4, kind: input, shape index: {}]   ;;  %s2563_s5 = inlined_call_operand.vmem [shape: f32[1,128], index: 5, kind: input, shape index: {}]   ;;  %s2564_s6 = inlined_call_operand.hbm [shape: bf16[3,128,128], index: 6, kind: input, shape index: {}]   ;;  %s2565_s7 = inlined_call_operand.vmem [shape: f32[1,128], index: 7, kind: input, shape index: {}]   ;;  %s2566_s8 = inlined_call_operand.hbm [shape: bf16[3,128,128], index: 8, kind: input, shape index: {}]   ;;  %s2567_s9 = inlined_call_operand.vmem [shape: f32[1,128], index: 9, kind: input, shape index: {}]   ;;  %s2568_s10 = inlined_call_operand.vmem [shape: f32[1,128], index: 10, kind: input, shape index: {}]   ;;  %s2569_s11 = inlined_call_operand.hbm [shape: f32[2,4,128], index: 11, kind: output, shape index: {}]  }
   0x1   :  { %2571 = sst [smem:[#allocation19_spill]] %s2559_s1 }
   0x2   :  { %2572 = sst [smem:[#allocation20_spill]] %s2561_s3 }
   0x3   :  { %2573 = sst [smem:[#allocation21_spill]] %s2564_s6 }
   0x4   :  { %2574 = sst [smem:[#allocation22_spill]] %s2566_s8 }
   0x5   :  { %16 = vsyncpa [#allocation5], 0 }
   0x6   :  { %18 = vsyncpa [#allocation5 + $0x1], 0 }
   0x7   :  { %19 = vsyncpa [#allocation8], 0 }
   0x8   :  { %20 = vsyncpa [#allocation11], 0 }
   0x9   :  { %21 = vsyncpa [#allocation6], 0 }
   0xa   :  { %23 = vsyncpa [#allocation6 + $0x1], 0  ;;  %s2368_s17 = smov 0   ;;  %s2370_s18 = smov 0  }
   0xb   :  { %s2372_s19 = smov 0   ;;  %s2374_s20 = smov 0  }
   0xc LB: > { %s2389_s21 = sadd.s32 4294967295, %s2298_s20   ;;  %s1532_s22 = sadd.s32 4294967294, %s2298_s20   ;;  %s2298_s20 = sphi %s2374_s20, %s2591_s20   ;;  %s2294_s19 = sphi %s2372_s19, %s2590_s19   ;;  %s2290_s18 = sphi %s2370_s18, %s2589_s18   ;;  %s2286_s17 = sphi %s2368_s17, %s2588_s17  }
   0xd   : > { %p49_p0 = scmp.ne.s32.totalorder %s2290_s18, %s2286_s17  ;;  %p50_p1 = scmp.eq.s32.totalorder %s2389_s21, 0 }
   0xe   : > { %p283_p2 = scmp.eq.s32.totalorder %s2389_s21, 1  ;;  %p289_p3 = scmp.eq.s32.totalorder %s1532_s22, 1 }
   0xf   : > { %p2398_p4 = por %p50_p1, %p49_p0  ;;  %p1533_p5 = scmp.ge.s32.totalorder %s2298_s20, 1 }
  0x10   : > { %p2403_p6 = por %p289_p3, %p49_p0  ;;  %p296_p7 = scmp.lt.s32.totalorder %s2298_s20, 3 }
  0x11   : > { %s2578_s1 = sld [smem:[#allocation19_spill]]  ;;  %s2300_s29 = smov [#allocation7]  }
  0x12   : > { %s2576_s24 = scalar_select %p2403_p6, 1, 0 }
  0x13   : > { %p2411_p8 = pnand %p1533_p5, %p296_p7  ;;  %s309_s30 = sshll.u32 %s2300_s29, 4  ;;  %s310_s30 = int_to_ptr.vmem [resolvable:$true] %s309_s30 }
  0x14   : > { %2577 = sst [smem:[#allocation18_spill]] %s2576_s24  ;;  %s2301_s16 = smov 64  }
  0x15   : > { %p1997_p9 = pneg %p2411_p8  ;;  %s2581_s6 = sld [smem:[#allocation21_spill]] }
  0x16   : > { %s2302_s22 = smov 4   ;;  %s2303_s25 = smov [#allocation10]  }
  0x17   : > { %s307_s27 = sshll.u32 %s2578_s1, 4  ;;  %p2419_p10 = pnand %p1997_p9, %p50_p1  ;;  %s308_s27 = int_to_ptr.hbm [resolvable:$true] %s307_s27 }
  0x18   : > { %s346_s26 = sshll.u32 %s2303_s25, 4  ;;  %s2582_s3 = sld [smem:[#allocation20_spill]]  ;;  %s347_s26 = int_to_ptr.vmem [resolvable:$true] %s346_s26 }
  0x19   : > { %2000 = dma.hbm_to_vmem [thread:$0]  (!%p2419_p10), %s308_s27, 1536, %s310_s30, [#allocation8], %s2301_s16, %s2301_s16, %s2302_s22  }
  0x1a   : > { %s2583_s8 = sld [smem:[#allocation22_spill]]  ;;  %s2304_s30 = smov [#allocation9]  }
  0x1b   : > { %s344_s15 = sshll.u32 %s2581_s6, 4  ;;  %s326_s25 = sshll.u32 %s2304_s30, 4  ;;  %s345_s15 = int_to_ptr.hbm [resolvable:$true] %s344_s15  ;;  %s327_s25 = int_to_ptr.vmem [resolvable:$true] %s326_s25 }
  0x1c   : > { %2006 = dma.hbm_to_vmem [thread:$0]  (!%p2419_p10), %s345_s15, 3072, %s347_s26, [#allocation11], %s2301_s16, %s2301_s16, %s2302_s22  }
  0x1d   : > { %s2305_s1 = smov [#allocation12]   ;;  %s2442_s15 = sadd.s32 1, %s2298_s20  }
  0x1e   : > { %s324_s24 = sshll.u32 %s2582_s3, 4  ;;  %s363_s29 = sshll.u32 %s2305_s1, 4  ;;  %s325_s24 = int_to_ptr.hbm [resolvable:$true] %s324_s24  ;;  %s364_s29 = int_to_ptr.vmem [resolvable:$true] %s363_s29 }
  0x1f   : > { %2003 = dma.hbm_to_vmem [thread:$0]  (!%p2419_p10), %s325_s24, 3072, %s327_s25, [#allocation8], %s2301_s16, %s2301_s16, %s2302_s22  }
  0x20   : > { %s361_s27 = sshll.u32 %s2583_s8, 4  ;;  %s36_s26 = sadd.s32 1, %s2294_s19  ;;  %s362_s27 = int_to_ptr.hbm [resolvable:$true] %s361_s27 }
  0x21   : > { %2009 = dma.hbm_to_vmem [thread:$0]  (!%p2419_p10), %s362_s27, 3072, %s364_s29, [#allocation11], %s2301_s16, %s2301_s16, %s2302_s22  }
  0x22   : > { %s33_s13 = ssub.s32 %s2298_s20, %s2442_s15  ;;  %p43_p12 = scmp.ne.s32.totalorder %s2294_s19, %s2290_s18 }
  0x23   : > { %p34_p13 = scmp.eq.s32.totalorder %s33_s13, 0  ;;  %p44_p0 = scmp.eq.s32.totalorder %s2298_s20, 0 }
  0x24   : > { %p2452_p3 = por %p283_p2, %p43_p12  ;;  %p2022_p5 = scmp.lt.s32.totalorder %s2298_s20, 2 }
  0x25   : > { %s2458_s24 = scalar_select %p34_p13, %s2294_s19, %s36_s26  }
  0x26   : > { %p45_p7 = por %p44_p0, %p43_p12  ;;  %s383_s30 = sand.u32 1, %s2294_s19  }
  0x27   : > { %s1539_s12 = sshll.u32 %s383_s30, 4  ;;  %s1892_s16 = sshll.u32 %s2298_s20, 4 }
  0x28   : > { %s392_s25 = scalar_lea.hbm %s2558_s0, %s1892_s16  ;;  %s387_s1 = scalar_lea.vmem [#allocation4], %s1539_s12 }
  0x29   : > { %s395_s29 = sshll.u32 %s387_s1, 4  ;;  %s393_s13 = sshll.u32 %s392_s25, 4  ;;  %s396_s29 = int_to_ptr.vmem [resolvable:$true] %s395_s29  ;;  %s394_s13 = int_to_ptr.hbm [resolvable:$true] %s393_s13 }
  0x2a   : > { %p2465_p2 = pnand %p2022_p5, %p45_p7  ;;  %s384_s26 = scalar_lea.sflag [#allocation5], %s383_s30 }
  0x2b   : > { %s2194_s6 = sshra.s32 %s394_s13, 4  ;;  %s2201_s22 = scalar_lea.hbm %s2558_s0, 32  ;;  %s2195_s6 = int_to_ptr.hbm [resolvable:$true] %s2194_s6 }
  0x2c   : > { %s2196_s8 = scalar_lea.hbm %s2195_s6, 16  ;;  %p2198_p10 = pneg %p2465_p2 }
  0x2d   : > { %p2197_p9 = scmp.ne.s32.totalorder %s2195_s6, %s2196_s8  ;;  %p2202_p0 = scmp.lt.s32.totalorder %s2195_s6, %s2558_s0 }
  0x2e   : > { %p2203_p5 = scmp.lt.s32.totalorder %s2201_s22, %s2196_s8 }
  0x2f   : > { %p2199_p12 = pnand %p2198_p10, %p2197_p9 }
  0x30   : > { %p2204_p7 = por %p2203_p5, %p2202_p0 }
  0x31   : > { %p2200_p13 = pneg %p2199_p12 }
  0x33   : > { %p2205_p11 = pnand %p2204_p7, %p2200_p13 }
  0x35   : > { %2208 = shalt.err (!%p2205_p11)
}
  0x36   : > { %s2306_s30 = smov 128   ;;  %s2307_s1 = smov 8  }
  0x37   : > { %2013 = dma.hbm_to_vmem [thread:$0]  (!%p2465_p2), %s394_s13, 256, %s396_s29, %s384_s26, %s2306_s30, %s2306_s30, %s2307_s1  }
  0x38   : > { %407 = sbr.rel (%p2411_p8) target bundleno = 681 (0x2a9), region = 64  ;;  %s2482_s16 = sand.u32 (!%p2411_p8), 1, %s2290_s18  }
  0x39   : > { %s1543_s12 = sshll.u32 (!%p2411_p8), %s2482_s16, 4  ;;  %s410_s6 = scalar_lea.sflag (!%p2411_p8), [#allocation5], %s2482_s16 }
  0x3a   : > { %s413_s8 = scalar_lea.vmem (!%p2411_p8), [#allocation4], %s1543_s12 }
  0x3d   : > { %2269 = dma.done.wait (%p2398_p4), %s410_s6, 256  }
  0x3e   : > { %2271 = vsyncadd (%p2398_p4), %s410_s6, 4294967040 }
  0x3f   : > { %2273 = dma.done.wait (%p50_p1), [#allocation8], 4608  }
  0x40   : > { %2275 = vsyncadd (%p50_p1), [#allocation8], 4294962688 }
  0x41   : > { %2277 = dma.done.wait (%p50_p1), [#allocation11], 6144  }
  0x42   : > { %2279 = vsyncadd (%p50_p1), [#allocation11], 4294961152  ;;  %v1896_v0 = vld [vmem:[#allocation7 + $0x18] sm:$0xff]  ;;  %v1895_v3 = vld [vmem:[#allocation7 + $0x10] sm:$0xff]  ;;  %vm509_vm0 = vcmask 523264   ;;  %vm585_vm1 = vcmask 1040384  }
  0x43   : > { %v1904_v1 = vld [vmem:[#allocation7 + $0x58] sm:$0xff]  ;;  %517 = vmatpush.bf16.msra.mxu0 %v1896_v0  ;;  %v1903_v4 = vld [vmem:[#allocation7 + $0x50] sm:$0xff]  ;;  %v1894_v6 = vld [vmem:[#allocation7 + $0x8] sm:$0xff]  ;;  %vm632_vm2 = vcmask 1046528   ;;  %s1548_s25 = sshll.u32 %s2482_s16, 2  ;;  %s1889_s30 = sshll.u32 %s2389_s21, 2 }
  0x44   : > { %v1900_v2 = vld [vmem:[#allocation7 + $0x38] sm:$0xff]  ;;  %573 = vmatpush.bf16.msra.mxu1 %v1904_v1  ;;  %v1899_v5 = vld [vmem:[#allocation7 + $0x30] sm:$0xff]  ;;  %v1902_v7 = vld [vmem:[#allocation7 + $0x48] sm:$0xff]  ;;  %s1419_s3 = scalar_lea.hbm %s2569_s11, %s1889_s30  ;;  %s472_s21 = scalar_lea.vmem [#allocation13], %s1548_s25 }
  0x45   : > { %620 = vmatpush.bf16.msra.mxu2 %v1900_v2  ;;  %v1898_v8 = vld [vmem:[#allocation7 + $0x28] sm:$0xff]  ;;  %v1893_v9 = vld [vmem:[#allocation7] sm:$0xff]  ;;  %v1920_v15 = vld [vmem:[#allocation9 + $0xb8] sm:$0xff]  ;;  %s1421_s29 = sshll.u32 %s472_s21, 4  ;;  %s1423_s13 = sshll.u32 %s1419_s3, 4  ;;  %s1422_s29 = int_to_ptr.vmem [resolvable:$true] %s1421_s29  ;;  %s1424_s13 = int_to_ptr.hbm [resolvable:$true] %s1423_s13 }
  0x46   : > { %v1901_v10 = vld [vmem:[#allocation7 + $0x40] sm:$0xff]  ;;  %v475_v12 = vld [vmem:[%s413_s8 + $0x8] sm:$0xff]  ;;  %738 = vmatpush.bf16.msra.mxu3 %v1920_v15  ;;  %v1919_v18 = vld [vmem:[#allocation9 + $0xb0] sm:$0xff]  ;;  %s1409_s26 = scalar_lea.sflag [#allocation6], %s2482_s16  ;;  %s2238_s22 = sshra.s32 %s1424_s13, 4  ;;  %s2239_s22 = int_to_ptr.hbm [resolvable:$true] %s2238_s22 }
  0x47   : > { %518 = vmatpush.bf16.msra.mxu0 %v1895_v3  ;;  %v474_v11 = vld [vmem:[%s413_s8] sm:$0xff]  ;;  %v1928_v16 = vld [vmem:[#allocation9 + $0x38] sm:$0xff]  ;;  %v1918_v21 = vld [vmem:[#allocation9 + $0xa8] sm:$0xff]  ;;  %s2240_s27 = scalar_lea.hbm %s2239_s22, 4  ;;  %s2244_s25 = scalar_lea.hbm %s2569_s11, 8 }
  0x48   : > { %574 = vmatpush.bf16.msra.mxu1 %v1903_v4  ;;  %v1897_v13 = vld [vmem:[#allocation7 + $0x20] sm:$0xff]  ;;  %v476_v14 = vpack.c.bf16 %v475_v12, %v474_v11  ;;  %v1912_v17 = vld [vmem:[#allocation9 + $0x78] sm:$0xff]  ;;  %v1927_v19 = vld [vmem:[#allocation9 + $0x30] sm:$0xff]  ;;  %p2241_p1 = scmp.ne.s32.totalorder %s2239_s22, %s2240_s27  ;;  %p2245_p11 = scmp.lt.s32.totalorder %s2239_s22, %s2569_s11 }
  0x49   : > { %621 = vmatpush.bf16.msra.mxu2 %v1899_v5  ;;  %v1911_v20 = vld [vmem:[#allocation9 + $0x70] sm:$0xff]  ;;  %v1926_v22 = vld [vmem:[#allocation9 + $0x28] sm:$0xff]  ;;  %v1917_v24 = vld [vmem:[#allocation9 + $0xa0] sm:$0xff]  ;;  %p2246_p2 = scmp.lt.s32.totalorder %s2244_s25, %s2240_s27 }
  0x4a   : > { %739 = vmatpush.bf16.msra.mxu3 %v1919_v18  ;;  %v1910_v23 = vld [vmem:[#allocation9 + $0x68] sm:$0xff]  ;;  %v1925_v25 = vld [vmem:[#allocation9 + $0x20] sm:$0xff]  ;;  %v1916_v27 = vld [vmem:[#allocation9 + $0x98] sm:$0xff]  ;;  %p2242_p4 = pnand %p2241_p1, %p2452_p3 }
  0x4b   : > { %519 = vmatpush.bf16.msra.mxu0 %v1894_v6  ;;  %v1909_v26 = vld [vmem:[#allocation9 + $0x60] sm:$0xff]  ;;  %v1924_v28 = vld [vmem:[#allocation9 + $0x18] sm:$0xff]  ;;  %v1915_v30 = vld [vmem:[#allocation9 + $0x90] sm:$0xff]  ;;  %p2247_p9 = por %p2246_p2, %p2245_p11 }
  0x4c   : > { %575 = vmatpush.bf16.msra.mxu1 %v1902_v7  ;;  %v1908_v29 = vld [vmem:[#allocation9 + $0x58] sm:$0xff]  ;;  %v1923_v31 = vld [vmem:[#allocation9 + $0x10] sm:$0xff]  ;;  %v1914_v33 = vld [vmem:[#allocation9 + $0x88] sm:$0xff]  ;;  %p2243_p8 = pneg %p2242_p4 }
  0x4d   : > { %622 = vmatpush.bf16.msra.mxu2 %v1898_v8  ;;  %v1907_v32 = vld [vmem:[#allocation9 + $0x50] sm:$0xff]  ;;  %v1922_v34 = vld [vmem:[#allocation9 + $0x8] sm:$0xff]  ;;  %v1913_v36 = vld [vmem:[#allocation9 + $0x80] sm:$0xff] }
  0x4e   : > { %740 = vmatpush.bf16.msra.mxu3 %v1918_v21  ;;  %v1906_v35 = vld [vmem:[#allocation9 + $0x48] sm:$0xff]  ;;  %v1921_v37 = vld [vmem:[#allocation9] sm:$0xff]  ;;  %v1936_v42 = vld [vmem:[#allocation10 + $0x38] sm:$0xff]  ;;  %p2248_p10 = pnand %p2247_p9, %p2243_p8 }
  0x4f   : > { %520 = vmatpush.bf16.msra.mxu0 %v1893_v9  ;;  %v1905_v38 = vld [vmem:[#allocation9 + $0x40] sm:$0xff]  ;;  %v1952_v43 = vld [vmem:[#allocation10 + $0xb8] sm:$0xff]  ;;  %v1935_v45 = vld [vmem:[#allocation10 + $0x30] sm:$0xff] }
  0x50   : > { %576 = vmatpush.bf16.msra.mxu1 %v1901_v10  ;;  %v1944_v44 = vld [vmem:[#allocation10 + $0x78] sm:$0xff]  ;;  %v1951_v46 = vld [vmem:[#allocation10 + $0xb0] sm:$0xff]  ;;  %v1934_v54 = vld [vmem:[#allocation10 + $0x28] sm:$0xff] }
  0x51   : > { %623 = vmatpush.bf16.msra.mxu2 %v1897_v13  ;;  %v1943_v47 = vld [vmem:[#allocation10 + $0x70] sm:$0xff]  ;;  %v1950_v55 = vld [vmem:[#allocation10 + $0xa8] sm:$0xff]  ;;  %v1933_v62 = vld [vmem:[#allocation10 + $0x20] sm:$0xff] }
  0x52   : > { %1565 = vmatmul.msk.bf16.vlgmr.msra.gmra.mxu0 %vm509_vm0, %v476_v14  ;;  %741 = vmatpush.bf16.msra.mxu3 %v1917_v24  ;;  %v2068_v57 = vld [vmem:[%s2560_s2] ss:$0 sm:$0xff]  ;;  %v1949_v63 = vld [vmem:[#allocation10 + $0xa0] sm:$0xff]  ;;  %v1948_v15 = vld [vmem:[#allocation10 + $0x98] sm:$0xff] }
  0x53   : > { %1582 = vmatmul.msk.bf16.vlgmr.msra.gmra.mxu1 %vm509_vm0, %v476_v14  ;;  %815 = vmatpush.bf16.msrb.mxu0 %v1928_v16  ;;  %v1942_v58 = vld [vmem:[#allocation10 + $0x68] sm:$0xff]  ;;  %v1941_v1 = vld [vmem:[#allocation10 + $0x60] sm:$0xff]  ;;  %v1940_v16 = vld [vmem:[#allocation10 + $0x58] sm:$0xff] }
  0x54   : > { %1599 = vmatmul.msk.bf16.vlgmr.msra.gmra.mxu2 %vm509_vm0, %v476_v14  ;;  %876 = vmatpush.bf16.msrb.mxu1 %v1912_v17  ;;  %v1932_v14 = vld [vmem:[#allocation10 + $0x18] sm:$0xff]  ;;  %v1931_v17 = vld [vmem:[#allocation10 + $0x10] sm:$0xff]  ;;  %v1946_v21 = vld [vmem:[#allocation10 + $0x88] sm:$0xff] }
  0x55   : > { %969 = vmatpush.bf16.msrb.mxu2 %v1936_v42  ;;  %v1947_v18 = vld [vmem:[#allocation10 + $0x90] sm:$0xff]  ;;  %v1945_v24 = vld [vmem:[#allocation10 + $0x80] sm:$0xff] }
  0x56   : > { %742 = vmatpush.bf16.msra.mxu3 %v1916_v27  ;;  %v1976_v27 = vld [vmem:[#allocation12 + $0x38] sm:$0xff] }
  0x57   : > { %816 = vmatpush.bf16.msrb.mxu0 %v1927_v19  ;;  %v1939_v19 = vld [vmem:[#allocation10 + $0x50] sm:$0xff] }
  0x58   : > { %877 = vmatpush.bf16.msrb.mxu1 %v1911_v20  ;;  %v1930_v20 = vld [vmem:[#allocation10 + $0x8] sm:$0xff] }
  0x59   : > { %970 = vmatpush.bf16.msrb.mxu2 %v1935_v45  ;;  %v1975_v45 = vld [vmem:[#allocation12 + $0x30] sm:$0xff] }
  0x5a   : > { %743 = vmatpush.bf16.msra.mxu3 %v1915_v30 }
  0x5b   : > { %817 = vmatpush.bf16.msrb.mxu0 %v1926_v22  ;;  %v1938_v22 = vld [vmem:[#allocation10 + $0x48] sm:$0xff] }
  0x5c   : > { %878 = vmatpush.bf16.msrb.mxu1 %v1910_v23  ;;  %v1929_v23 = vld [vmem:[#allocation10] sm:$0xff] }
  0x5d   : > { %971 = vmatpush.bf16.msrb.mxu2 %v1934_v54  ;;  %v1972_v54 = vld [vmem:[#allocation12 + $0x18] sm:$0xff] }
  0x5e   : > { %744 = vmatpush.bf16.msra.mxu3 %v1914_v33 }
  0x5f   : > { %818 = vmatpush.bf16.msrb.mxu0 %v1925_v25  ;;  %v1937_v25 = vld [vmem:[#allocation10 + $0x40] sm:$0xff] }
  0x60   : > { %879 = vmatpush.bf16.msrb.mxu1 %v1909_v26  ;;  %v1968_v26 = vld [vmem:[#allocation12 + $0xb8] sm:$0xff] }
  0x61   : > { %972 = vmatpush.bf16.msrb.mxu2 %v1933_v62  ;;  %v1961_v62 = vld [vmem:[#allocation12 + $0x80] sm:$0xff] }
  0x62   : > { %745 = vmatpush.bf16.msra.mxu3 %v1913_v36 }
  0x63   : > { %819 = vmatpush.bf16.msrb.mxu0 %v1924_v28  ;;  %v1960_v28 = vld [vmem:[#allocation12 + $0x78] sm:$0xff] }
  0x64   : > { %880 = vmatpush.bf16.msrb.mxu1 %v1908_v29 }
  0x65   : > { %973 = vmatpush.bf16.msrb.mxu2 %v1932_v14 }
  0x66   : > { %1064 = vmatpush.bf16.msrb.mxu3 %v1952_v43 }
  0x67   : > { %820 = vmatpush.bf16.msrb.mxu0 %v1923_v31 }
  0x68   : > { %881 = vmatpush.bf16.msrb.mxu1 %v1907_v32 }
  0x69   : > { %974 = vmatpush.bf16.msrb.mxu2 %v1931_v17 }
  0x6a   : > { %1065 = vmatpush.bf16.msrb.mxu3 %v1951_v46  ;;  %v1959_v46 = vld [vmem:[#allocation12 + $0x70] sm:$0xff] }
  0x6b   : > { %821 = vmatpush.bf16.msrb.mxu0 %v1922_v34  ;;  %v2069_v34 = vld [vmem:[%s2562_s4] ss:$0 sm:$0xff] }
  0x6c   : > { %882 = vmatpush.bf16.msrb.mxu1 %v1906_v35 }
  0x6d   : > { %975 = vmatpush.bf16.msrb.mxu2 %v1930_v20 }
  0x6e   : > { %1066 = vmatpush.bf16.msrb.mxu3 %v1950_v55  ;;  %v1956_v55 = vld [vmem:[#allocation12 + $0x58] sm:$0xff] }
  0x6f   : > { %822 = vmatpush.bf16.msrb.mxu0 %v1921_v37 }
  0x70   : > { %883 = vmatpush.bf16.msrb.mxu1 %v1905_v38 }
  0x71   : > { %976 = vmatpush.bf16.msrb.mxu2 %v1929_v23 }
  0x72   : > { %1067 = vmatpush.bf16.msrb.mxu3 %v1949_v63  ;;  %v1969_v63 = vld [vmem:[#allocation12] sm:$0xff] }
  0x73   : > { %1129 = vmatpush.bf16.msra.mxu0 %v1944_v44  ;;  %v1967_v44 = vld [vmem:[#allocation12 + $0xb0] sm:$0xff] }
  0x74   : > { %1241 = vmatpush.bf16.msra.mxu1 %v1968_v26 }
  0x75   : > { %1318 = vmatpush.bf16.msra.mxu2 %v1976_v27 }
  0x76   : > { %1068 = vmatpush.bf16.msrb.mxu3 %v1948_v15 }
  0x77   : > { %1130 = vmatpush.bf16.msra.mxu0 %v1943_v47  ;;  %v1966_v47 = vld [vmem:[#allocation12 + $0xa8] sm:$0xff] }
  0x78   : > { %1242 = vmatpush.bf16.msra.mxu1 %v1967_v44 }
  0x79   : > { %1319 = vmatpush.bf16.msra.mxu2 %v1975_v45 }
  0x7a   : > { %1069 = vmatpush.bf16.msrb.mxu3 %v1947_v18 }
  0x7b   : > { %1131 = vmatpush.bf16.msra.mxu0 %v1942_v58  ;;  %v1955_v58 = vld [vmem:[#allocation12 + $0x50] sm:$0xff] }
  0x7c   : > { %1243 = vmatpush.bf16.msra.mxu1 %v1966_v47 }
  0x7e   : > { %1070 = vmatpush.bf16.msrb.mxu3 %v1946_v21 }
  0x7f   : > { %1132 = vmatpush.bf16.msra.mxu0 %v1941_v1 }
  0x82   : > { %1071 = vmatpush.bf16.msrb.mxu3 %v1945_v24 }
  0x83   : > { %1133 = vmatpush.bf16.msra.mxu0 %v1940_v16 }
  0x87   : > { %1134 = vmatpush.bf16.msra.mxu0 %v1939_v19 }
  0x8b   : > { %1135 = vmatpush.bf16.msra.mxu0 %v1938_v22 }
  0x8f   : > { %1136 = vmatpush.bf16.msra.mxu0 %v1937_v25  ;;  %v2072_v25 = vld [vmem:[%s2567_s9] ss:$0 sm:$0xff] }
  0xcf   : > { %v522_v39 = vpop.f32.mrf.mxu0 }
  0xd0   : > { %v578_v40 = vpop.f32.mrf.mxu1  ;;  %v586_v41 = vrot.slane %v522_v39, 7  ;;  %v2070_v39 = vld [vmem:[%s2563_s5] ss:$0 sm:$0xff] }
  0xd1   : > { %v633_v52 = vrot.slane %v578_v40, 1 }
  0xd2   : > { %v591_v48 = vsel %vm585_vm1, 0.0, %v586_v41 }
  0xd7   : > { %v625_v49 = vpop.f32.mrf.mxu2  ;;  %v524_v50 = vpop.f32.mrf.mxu0 }
  0xd8   : > { %v580_v51 = vpop.f32.mrf.mxu1  ;;  %v626_v56 = vadd.f32 %v625_v49, %v591_v48  ;;  %v587_v59 = vrot.slane %v524_v50, 7  ;;  %v1974_v48 = vld [vmem:[#allocation12 + $0x28] sm:$0xff]  ;;  %v1965_v50 = vld [vmem:[#allocation12 + $0xa0] sm:$0xff] }
  0xd9   : > { %v634_v53 = vrot.slane %v580_v51, 1  ;;  %v1958_v49 = vld [vmem:[#allocation12 + $0x68] sm:$0xff]  ;;  %1320 = vmatpush.bf16.msra.mxu2 %v1974_v48  ;;  %v1973_v51 = vld [vmem:[#allocation12 + $0x20] sm:$0xff]  ;;  %1244 = vmatpush.bf16.msra.mxu1 %v1965_v50 }
  0xda   : > { %v588_v2 = vsel %vm585_vm1, %v586_v41, %v587_v59  ;;  %v1962_v59 = vld [vmem:[#allocation12 + $0x88] sm:$0xff] }
  0xdb   : > { %v635_v60 = vsel %vm632_vm2, %v633_v52, %v634_v53  ;;  %v638_v6 = vsel %vm632_vm2, %v634_v53, 0.0  ;;  %v1957_v52 = vld [vmem:[#allocation12 + $0x60] sm:$0xff]  ;;  %v1964_v53 = vld [vmem:[#allocation12 + $0x98] sm:$0xff] }
  0xdc   : > { %v639_v61 = vadd.f32 %v635_v60, %v626_v56  ;;  %v1963_v56 = vld [vmem:[#allocation12 + $0x90] sm:$0xff]  ;;  %v1970_v60 = vld [vmem:[#allocation12 + $0x8] sm:$0xff] }
  0xdd   : > { %1321 = vmatpush.bf16.msra.mxu2 %v1973_v51  ;;  %1245 = vmatpush.bf16.msra.mxu1 %v1964_v53 }
  0xde   : > { %v645_v0 = vadd.f32 %v2068_v57, %v639_v61  ;;  %v1954_v61 = vld [vmem:[#allocation12 + $0x48] sm:$0xff] }
  0xdf   : > { %v627_v3 = vpop.f32.mrf.mxu2 }
  0xe0   : > { %v628_v4 = vadd.f32 %v627_v3, %v588_v2  ;;  %v647_v5 = vmax.f32 %v645_v0, 0.0  ;;  %v1953_v0 = vld [vmem:[#allocation12 + $0x40] sm:$0xff] }
  0xe1   : > { %1322 = vmatpush.bf16.msra.mxu2 %v1972_v54  ;;  %1246 = vmatpush.bf16.msra.mxu1 %v1963_v56 }
  0xe2   : > { %v640_v7 = vadd.f32 %v638_v6, %v628_v4  ;;  %649 = vst [vmem:[#allocation2] sm:$0xff] %v647_v5 }
  0xe4   : > { %v646_v8 = vadd.f32 %v2068_v57, %v640_v7  ;;  %v1971_v57 = vld [vmem:[#allocation12 + $0x10] sm:$0xff] }
  0xe5   : > { %1323 = vmatpush.bf16.msra.mxu2 %v1971_v57  ;;  %1247 = vmatpush.bf16.msra.mxu1 %v1962_v59 }
  0xe6   : > { %v648_v9 = vmax.f32 %v646_v8, 0.0 }
  0xe8   : > { %650 = vst [vmem:[#allocation2 + $0x8] sm:$0xff] %v648_v9  ;;  %v2071_v9 = vld [vmem:[%s2565_s7] ss:$0 sm:$0xff] }
  0xe9   : > { %1324 = vmatpush.bf16.msra.mxu2 %v1970_v60  ;;  %1248 = vmatpush.bf16.msra.mxu1 %v1961_v62 }
  0xed   : > { %1325 = vmatpush.bf16.msra.mxu2 %v1969_v63 }
  0xef   : > { %v654_v10 = vld [vmem:[#allocation2 + $0x1] ss:$2 sm:$0xff]  ;;  %v651_v11 = vld [vmem:[#allocation2] ss:$2 sm:$0xff] }
  0xf0   : > { %v655_v12 = vpack.c.bf16 %v654_v10, %v654_v10  ;;  %v652_v13 = vpack.c.bf16 %v651_v11, %v651_v11 }
  0xf2   : > { %746 = vmatmul.bf16.vlgmr.msra.gmra.mxu3 %v655_v12  ;;  %823 = vmatmul.bf16.vlgmr.msrb.gmra.mxu0 %v655_v12 }
  0xf3   : > { %884 = vmatmul.bf16.vlgmr.msrb.gmra.mxu1 %v652_v13  ;;  %1379 = vmatpush.bf16.msra.mxu3 %v1960_v28 }
  0xf7   : > { %1380 = vmatpush.bf16.msra.mxu3 %v1959_v46 }
  0xfb   : > { %1381 = vmatpush.bf16.msra.mxu3 %v1958_v49 }
  0xff   : > { %1382 = vmatpush.bf16.msra.mxu3 %v1957_v52 }
 0x103   : > { %1383 = vmatpush.bf16.msra.mxu3 %v1956_v55 }
 0x107   : > { %1384 = vmatpush.bf16.msra.mxu3 %v1955_v58 }
 0x10b   : > { %1385 = vmatpush.bf16.msra.mxu3 %v1954_v61 }
 0x10f   : > { %1386 = vmatpush.bf16.msra.mxu3 %v1953_v0 }
 0x16f   : > { %v824_v29 = vpop.f32.mrf.mxu0 }
 0x170   : > { %v885_v30 = vpop.f32.mrf.mxu1  ;;  %v890_v31 = vrot.slane %v824_v29, 7  ;;  %v2073_v29 = vld [vmem:[%s2568_s10] ss:$0 sm:$0xff] }
 0x172   : > { %v892_v35 = vsel %vm585_vm1, 0.0, %v890_v31 }
 0x175   : > { %v747_v32 = vpop.f32.mrf.mxu3 }
 0x176   : > { %v886_v33 = vadd.f32 %v885_v30, %v747_v32 }
 0x177   : > { %v826_v36 = vpop.f32.mrf.mxu0 }
 0x178   : > { %v893_v37 = vadd.f32 %v892_v35, %v886_v33  ;;  %v887_v38 = vpop.f32.mrf.mxu1 }
 0x17a   : > { %v898_v40 = vmul.f32 %v2069_v34, %v893_v37 }
 0x17c   : > { %v903_v41 = vadd.f32 %v2070_v39, %v898_v40 }
 0x17d   : > { %v749_v42 = vpop.f32.mrf.mxu3 }
 0x17e   : > { %v904_v43 = vpack.c.bf16 %v903_v41, %v903_v41 }
 0x180   : > { %977 = vmatmul.bf16.vlgmr.msrb.gmra.mxu2 %v904_v43  ;;  %1072 = vmatmul.bf16.vlgmr.msrb.gmra.mxu3 %v904_v43 }
 0x181   : > { %1137 = vmatmul.bf16.vlgmr.msra.gmra.mxu0 %v904_v43 }
 0x1fe   : > { %v1138_v1 = vpop.f32.mrf.mxu0 }
 0x203   : > { %v978_v2 = vpop.f32.mrf.mxu2  ;;  %v1073_v3 = vpop.f32.mrf.mxu3 }
 0x204   : > { %v1078_v4 = vrot.slane %v978_v2, 7  ;;  %v1143_v5 = vrot.slane %v1073_v3, 1 }
 0x206   : > { %v1080_v6 = vsel %vm585_vm1, 0.0, %v1078_v4  ;;  %v1140_v7 = vpop.f32.mrf.mxu0  ;;  %v1145_v10 = vsel %vm632_vm2, %v1143_v5, 0.0 }
 0x207   : > { %v1139_v8 = vadd.f32 %v1138_v1, %v1080_v6 }
 0x209   : > { %v1146_v11 = vadd.f32 %v1145_v10, %v1139_v8 }
 0x20b   : > { %v1151_v12 = vadd.f32 %v2071_v9, %v1146_v11  ;;  %v980_v13 = vpop.f32.mrf.mxu2  ;;  %v1075_v14 = vpop.f32.mrf.mxu3 }
 0x20d   : > { %v1152_v15 = vmax.f32 %v1151_v12, 0.0 }
 0x20f   : > { %1153 = vst [vmem:[#allocation3] sm:$0xff] %v1152_v15 }
 0x216   : > { %v1157_v16 = vld [vmem:[#allocation3 + $0x1] ss:$2 sm:$0xf]  ;;  %v1154_v17 = vld [vmem:[#allocation3] ss:$2 sm:$0xf] }
 0x217   : > { %v1158_v18 = vpack.c.bf16 %v1157_v16, %v1157_v16  ;;  %v1155_v19 = vpack.c.bf16 %v1154_v17, %v1154_v17 }
 0x219   : > { %1249 = vmatmul.bf16.vlgmr.msra.gmra.mxu1 %v1158_v18  ;;  %1326 = vmatmul.bf16.vlgmr.msra.gmra.mxu2 %v1158_v18 }
 0x21a   : > { %1387 = vmatmul.bf16.vlgmr.msra.gmra.mxu3 %v1155_v19 }
 0x296   : > { %v1250_v20 = vpop.f32.mrf.mxu1 }
 0x29c   : > { %v1327_v21 = vpop.f32.mrf.mxu2 }
 0x29d   : > { %v1393_v22 = vrot.slane %v1327_v21, 7  ;;  %v1388_v23 = vpop.f32.mrf.mxu3 }
 0x29e   : > { %v1389_v24 = vadd.f32 %v1388_v23, %v1250_v20  ;;  %v1252_v26 = vpop.f32.mrf.mxu1 }
 0x29f   : > { %v1395_v27 = vsel %vm585_vm1, 0.0, %v1393_v22 }
 0x2a0   : > { %v1396_v28 = vadd.f32 %v1395_v27, %v1389_v24 }
 0x2a2   : > { %v1401_v30 = vmul.f32 %v2072_v25, %v1396_v28 }
 0x2a4   : > { %v1406_v31 = vadd.f32 %v2073_v29, %v1401_v30  ;;  %v1329_v32 = vpop.f32.mrf.mxu2 }
 0x2a5   : > { %v1390_v33 = vpop.f32.mrf.mxu3 }
 0x2a6   : > { %1407 = vst [vmem:[%s472_s21] sm:$0xf] %v1406_v31 }
 0x2a7   : > { %2251 = shalt.err (!%p2248_p10)
}
 0x2a8   : > { %1995 = dma.vmem_to_hbm [thread:$0]  (%p2452_p3), %s1422_s29, 64, %s1424_s13, %s1409_s26  }
 0x2a9 PF: > { %s1435_s8 = sand.u32 1, %s2286_s17   ;;  %p2587_p12 = scmp.ge.s32.totalorder %s2298_s20, 2 }
 0x2aa   : > { %s1436_s3 = scalar_lea.sflag [#allocation6], %s1435_s8 }
 0x2ab   : > { %p2015_p13 = pnand %p2587_p12, %p2403_p6 }
 0x2ad   : > { %p2016_p0 = pneg %p2015_p13 }
 0x2af   : > { %2281 = dma.done.wait (%p2016_p0), %s1436_s3, 64  }
 0x2b0   : > { %2283 = vsyncadd (%p2016_p0), %s1436_s3, 4294967232  ;;  %p26_p5 = scmp.ge.s32.totalorder %s2442_s15, 4   ;;  %s2588_s17 = smov %s2290_s18 }
 0x2b1   : > { %s2589_s18 = smov %s2294_s19  ;;  %s2590_s19 = smov %s2458_s24 }
 0x2b2   : > { %s2591_s20 = smov %s2442_s15  ;;  %28 = sbr.rel (!%p26_p5) target bundleno = 12 (0xc), region = 135 }
 0x2b7   :  { %1442 = vsyncpa [#allocation5], 1 }
 0x2b8   :  { %1444 = vsyncpa [#allocation5 + $0x1], 1 }
 0x2b9   :  { %1445 = vsyncpa [#allocation8], 1 }
 0x2ba   :  { %1446 = vsyncpa [#allocation11], 1 }
 0x2bb   :  { %1447 = vsyncpa [#allocation6], 1 }
 0x2bc   :  { %1449 = vsyncpa [#allocation6 + $0x1], 1 }

</bundles_post_ra>
